<compile_context>
chip_gen: v6e
topology: v6e:2x2x1
jax: 0.10.0
libtpu: 0.0.40
codegen_flags: <defaults>
</compile_context>

<pallas_src>
import functools

import jax
import jax.numpy as jnp
from jax.experimental import pallas as pl
from jax.experimental.pallas import tpu as pltpu

LANES = 128


def _loss_partials_kernel(p_ref, t_ref, out_ref, *,
                          real_weight, fake_weight, n_channels, n_valid,
                          t_rows, steps_per_shard, mask_tail, lane_channel):
    """Accumulate per-shard [weighted-BCE partial, impulse-sq partial].

    out_ref block: (1, 2, acc_rows, 128) f32, resident across the inner
    ("arbitrary") grid axis; zeroed at step 0 of each shard.
    """
    step = pl.program_id(1)

    @pl.when(step == 0)
    def _init():
        out_ref[...] = jnp.zeros_like(out_ref)

    lane_iota = jax.lax.broadcasted_iota(jnp.int32, (t_rows, LANES), 1)
    if mask_tail or not lane_channel:
        # Global flat index of each element in the original (B, N, C) tensor.
        # NOTE: int32 index math limits total element count to < 2**31.
        row_iota = jax.lax.broadcasted_iota(jnp.int32, (t_rows, LANES), 0)
        block_idx = pl.program_id(0) * steps_per_shard + step   # UNclamped on purpose
        flat = (block_idx * t_rows + row_iota) * LANES + lane_iota

    # Channel id == flat % C; when 128 % C == 0 it is a pure lane pattern.
    if lane_channel:
        is_cls = (lane_iota % n_channels) == 0
    else:
        is_cls = (flat % n_channels) == 0

    if mask_tail:
        # Masks out: wrapper 128-pad, the partial last tile, and fully
        # out-of-range (clamped-DMA) overflow tiles of the last shard.
        valid = flat < n_valid
        cls_mask = valid & is_cls
        imp_mask = valid & jnp.logical_not(is_cls)
    else:
        cls_mask = is_cls
        imp_mask = jnp.logical_not(is_cls)

    p = p_ref[...].astype(jnp.float32)
    t = t_ref[...].astype(jnp.float32)

    # Weighted BCE (PyTorch clamps each log term at -100; soft targets OK).
    # On impulse / invalid lanes log() may give NaN/Inf -- the where() below
    # selects 0.0 there, so nothing propagates into the sums.
    log_p = jnp.maximum(jnp.log(p), -100.0)
    log_1mp = jnp.maximum(jnp.log(1.0 - p), -100.0)
    w = t * real_weight + (1.0 - t) * fake_weight
    bce = -(w * (t * log_p + (1.0 - t) * log_1mp))

    d = p - t
    sq = d * d

    bce_sel = jnp.where(cls_mask, bce, 0.0)
    sq_sel = jnp.where(imp_mask, sq, 0.0)

    if t_rows % 8 == 0:
        # Fold the tile onto one (8, 128) vreg (VPU adds only); the single
        # cross-lane reduce happens once, in the wrapper.
        bce_part = bce_sel.reshape(t_rows // 8, 8, LANES).sum(axis=0)
        sq_part = sq_sel.reshape(t_rows // 8, 8, LANES).sum(axis=0)
    else:
        # Tiny single-block case: accumulator sublane dim == t_rows.
        bce_part = bce_sel
        sq_part = sq_sel

    out_ref[0, 0, :, :] += bce_part
    out_ref[0, 1, :, :] += sq_part


def point_net_impulse_loss(preds_all, target_all, real_weight, fake_weight, *,
                           max_block_rows=8192):
    """preds_all, target_all: (B, N, C), C >= 2 (channel 0 = cls prob/label,
    channels 1: = impulse vector). Returns a scalar f32 loss."""
    B, N, C = preds_all.shape
    M = B * N
    n_valid = M * C

    pad = (-n_valid) % LANES
    rows = (n_valid + pad) // LANES

    def _flat2d(x):
        x = x.reshape(n_valid)            # free: contiguous (B, N, C) -> flat
        if pad:
            # Only for non-128-aligned B*N*C (rare); usual shapes skip this copy.
            x = jnp.pad(x, (0, pad))
        return x.reshape(rows, LANES)     # free, lane-dense view

    p2 = _flat2d(preds_all)
    t2 = _flat2d(target_all)

    # Sublane-tile cap: multiple of 16 so bf16 inputs also satisfy the
    # (16, 128) layout tiling; full-extent blocks cover the tiny-input case.
    cap = max(16, (int(max_block_rows) // 16) * 16)
    t_rows = rows if rows <= cap else cap
    tiles = pl.cdiv(rows, t_rows)
    num_shards = 2 if tiles >= 2 else 1            # v7x megacore; harmless on 1-TC chips
    steps_per_shard = pl.cdiv(tiles, num_shards)

    acc_rows = 8 if t_rows % 8 == 0 else t_rows
    mask_tail = (pad != 0) or (num_shards * steps_per_shard * t_rows != rows)
    lane_channel = (LANES % C) == 0

    kernel = functools.partial(
        _loss_partials_kernel,
        real_weight=float(real_weight),
        fake_weight=float(fake_weight),
        n_channels=C,
        n_valid=n_valid,
        t_rows=t_rows,
        steps_per_shard=steps_per_shard,
        mask_tail=mask_tail,
        lane_channel=lane_channel,
    )

    def data_map(s, i):
        # Clamp so overflow tiles of the last shard re-read the final real tile;
        # their contributions are masked out in-kernel via the UNclamped index.
        return (jnp.minimum(s * steps_per_shard + i, tiles - 1), 0)

    itemsize = jnp.dtype(preds_all.dtype).itemsize
    cost = pl.CostEstimate(
        flops=15 * n_valid,
        transcendentals=2 * rows * LANES,
        bytes_accessed=2 * rows * LANES * itemsize
        + num_shards * 2 * acc_rows * LANES * 4,
    )

    partials = pl.pallas_call(
        kernel,
        out_shape=jax.ShapeDtypeStruct((num_shards, 2, acc_rows, LANES), jnp.float32),
        grid=(num_shards, steps_per_shard),
        in_specs=[
            pl.BlockSpec((t_rows, LANES), data_map),
            pl.BlockSpec((t_rows, LANES), data_map),
        ],
        out_specs=pl.BlockSpec((1, 2, acc_rows, LANES), lambda s, i: (s, 0, 0, 0)),
        compiler_params=pltpu.CompilerParams(
            dimension_semantics=("parallel", "arbitrary"),
            vmem_limit_bytes=40 * 1024 * 1024,
        ),
        cost_estimate=cost,
    )(p2, t2)

    bce_sum = jnp.sum(partials[:, 0])
    sq_sum = jnp.sum(partials[:, 1])
    # F.binary_cross_entropy mean-reduces over B*N elements; torch.norm is the
    # Frobenius norm over all impulse elements.
    return 0.5 * (bce_sum / jnp.float32(M)) + 0.5 * jnp.sqrt(sq_sum)


def _reference_loss(preds_all, target_all, real_weight, fake_weight):
    preds = preds_all[:, :, 0]
    target = target_all[:, :, 0]
    w = target * real_weight + (1.0 - target) * fake_weight
    log_p = jnp.maximum(jnp.log(preds), -100.0)
    log_1mp = jnp.maximum(jnp.log(1.0 - preds), -100.0)
    bce = jnp.mean(-w * (target * log_p + (1.0 - target) * log_1mp))
    diff = preds_all[:, :, 1:] - target_all[:, :, 1:]
    return 0.5 * bce + 0.5 * jnp.sqrt(jnp.sum(diff * diff))


if __name__ == "__main__":
    # Deterministic "module parameters" (constructor args of PointNetImpulseLoss).
    REAL_WEIGHT = 2.0
    FAKE_WEIGHT = 0.5

    # Small shapes implied by the forward: (batch, n_points, channels), channels >= 2.
    B, N, C = 2, 16, 4
    key = jax.random.PRNGKey(0)
    k1, k2, k3 = jax.random.split(key, 3)

    # Predictions: channel 0 must be a probability in (0, 1); impulse channels free.
    preds_cls = jax.nn.sigmoid(jax.random.normal(k1, (B, N, 1), jnp.float32))
    preds_imp = jax.random.normal(k2, (B, N, C - 1), jnp.float32)
    preds_all = jnp.concatenate([preds_cls, preds_imp], axis=-1)

    # Targets: channel 0 binary labels; impulse channels continuous.
    tgt_cls = jax.random.bernoulli(k3, 0.5, (B, N, 1)).astype(jnp.float32)
    tgt_imp = jax.random.normal(jax.random.fold_in(key, 7), (B, N, C - 1), jnp.float32)
    target_all = jnp.concatenate([tgt_cls, tgt_imp], axis=-1)

    loss = point_net_impulse_loss(preds_all, target_all, REAL_WEIGHT, FAKE_WEIGHT)
    jax.block_until_ready(loss)

    ref = _reference_loss(preds_all, target_all, REAL_WEIGHT, FAKE_WEIGHT)
    assert jnp.allclose(loss, ref, rtol=1e-5, atol=1e-5), (loss, ref)

    print("KERNEL_OK")
</pallas_src>

<mosaic_0001>
module attributes {stable_mosaic.version = 11 : i64} {
  func.func @_loss_partials_kernel(%arg0: i32, %arg1: i32, %arg2: memref<1x128xf32, #tpu.memory_space<vmem>>, %arg3: memref<1x128xf32, #tpu.memory_space<vmem>>, %arg4: memref<1x2x1x128xf32, #tpu.memory_space<vmem>>) attributes {dimension_semantics = [#tpu.dimension_semantics<parallel>, #tpu.dimension_semantics<arbitrary>], iteration_bounds = array<i64: 1, 1>, scalar_prefetch = 0 : i64, scratch_operands = 0 : i64, tpu.core_type = #tpu.core_type<tc>, window_params = [{transform_indices = @transform_0, window_bounds = array<i64: 1, 128>}, {transform_indices = @transform_1, window_bounds = array<i64: 1, 128>}, {transform_indices = @transform_2, window_bounds = array<i64: 1, 2, 1, 128>}]} {
    %c0_i32 = arith.constant 0 : i32
    %0 = arith.cmpi eq, %arg1, %c0_i32 : i32
    %1 = arith.extui %0 : i1 to i32
    %c0_i32_0 = arith.constant 0 : i32
    %2 = arith.cmpi ne, %1, %c0_i32_0 : i32
    scf.if %2 {
      %cst_34 = arith.constant 0.000000e+00 : f32
      %66 = vector.broadcast %cst_34 : f32 to vector<1x2x1x128xf32>
      %c0_35 = arith.constant 0 : index
      %c0_36 = arith.constant 0 : index
      %c0_37 = arith.constant 0 : index
      %c0_38 = arith.constant 0 : index
      %67 = vector.load %arg4[%c0_35, %c0_36, %c0_37, %c0_38] : memref<1x2x1x128xf32, #tpu.memory_space<vmem>>, vector<1x2x1x128xf32>
      tpu.vector_store %arg4[%c0_35, %c0_36, %c0_37, %c0_38], %66 {strides = array<i32>} : memref<1x2x1x128xf32, #tpu.memory_space<vmem>>, vector<1x2x1x128xf32>,
    } else {
    }
    %3 = tpu.iota {dimensions = array<i32: 1>} : vector<1x128xi32>
    %c4_i32 = arith.constant 4 : i32
    %c0_i32_1 = arith.constant 0 : i32
    %4 = arith.cmpi eq, %c4_i32, %c0_i32_1 : i32
    %c1_i32 = arith.constant 1 : i32
    %5 = arith.select %4, %c1_i32, %c4_i32 : i32
    %6 = vector.broadcast %5 : i32 to vector<1x128xi32>
    %7 = arith.remsi %3, %6 : vector<1x128xi32>
    %c0_i32_2 = arith.constant 0 : i32
    %8 = vector.broadcast %c0_i32_2 : i32 to vector<1x128xi32>
    %9 = arith.cmpi ne, %7, %8 : vector<1x128xi32>
    %c0_i32_3 = arith.constant 0 : i32
    %10 = vector.broadcast %c0_i32_3 : i32 to vector<1x128xi32>
    %11 = arith.cmpi slt, %7, %10 : vector<1x128xi32>
    %c0_i32_4 = arith.constant 0 : i32
    %12 = arith.cmpi slt, %5, %c0_i32_4 : i32
    %13 = vector.broadcast %12 : i1 to vector<1x128xi1>
    %14 = vector.broadcast %13 : vector<1x128xi1> to vector<1x128xi1>
    %15 = arith.xori %11, %14 : vector<1x128xi1>
    %16 = arith.andi %15, %9 : vector<1x128xi1>
    %17 = vector.broadcast %5 : i32 to vector<1x128xi32>
    %18 = arith.addi %7, %17 : vector<1x128xi32>
    %19 = arith.select %16, %18, %7 : vector<1x128xi1>, vector<1x128xi32>
    %c0_i32_5 = arith.constant 0 : i32
    %20 = vector.broadcast %c0_i32_5 : i32 to vector<1x128xi32>
    %21 = arith.cmpi eq, %19, %20 : vector<1x128xi32>
    %cst = arith.constant dense<true> : vector<1x128xi1>
    %22 = arith.xori %21, %cst : vector<1x128xi1>
    %c0 = arith.constant 0 : index
    %c0_6 = arith.constant 0 : index
    %23 = vector.load %arg2[%c0, %c0_6] : memref<1x128xf32, #tpu.memory_space<vmem>>, vector<1x128xf32>
    %c0_7 = arith.constant 0 : index
    %c0_8 = arith.constant 0 : index
    %24 = vector.load %arg3[%c0_7, %c0_8] : memref<1x128xf32, #tpu.memory_space<vmem>>, vector<1x128xf32>
    %25 = math.log %23 : vector<1x128xf32>
    %cst_9 = arith.constant -1.000000e+02 : f32
    %26 = vector.broadcast %cst_9 : f32 to vector<1x128xf32>
    %27 = arith.maximumf %25, %26 : vector<1x128xf32>
    %cst_10 = arith.constant 1.000000e+00 : f32
    %28 = vector.broadcast %cst_10 : f32 to vector<1x128xf32>
    %29 = arith.subf %28, %23 : vector<1x128xf32>
    %30 = math.log %29 : vector<1x128xf32>
    %cst_11 = arith.constant -1.000000e+02 : f32
    %31 = vector.broadcast %cst_11 : f32 to vector<1x128xf32>
    %32 = arith.maximumf %30, %31 : vector<1x128xf32>
    %cst_12 = arith.constant 2.000000e+00 : f32
    %33 = vector.broadcast %cst_12 : f32 to vector<1x128xf32>
    %34 = arith.mulf %24, %33 : vector<1x128xf32>
    %cst_13 = arith.constant 1.000000e+00 : f32
    %35 = vector.broadcast %cst_13 : f32 to vector<1x128xf32>
    %36 = arith.subf %35, %24 : vector<1x128xf32>
    %cst_14 = arith.constant 5.000000e-01 : f32
    %37 = vector.broadcast %cst_14 : f32 to vector<1x128xf32>
    %38 = arith.mulf %36, %37 : vector<1x128xf32>
    %39 = arith.addf %34, %38 : vector<1x128xf32>
    %40 = arith.mulf %24, %27 : vector<1x128xf32>
    %cst_15 = arith.constant 1.000000e+00 : f32
    %41 = vector.broadcast %cst_15 : f32 to vector<1x128xf32>
    %42 = arith.subf %41, %24 : vector<1x128xf32>
    %43 = arith.mulf %42, %32 : vector<1x128xf32>
    %44 = arith.addf %40, %43 : vector<1x128xf32>
    %45 = arith.mulf %39, %44 : vector<1x128xf32>
    %cst_16 = arith.constant 0.000000e+00 : f32
    %46 = vector.broadcast %cst_16 : f32 to vector<1x128xf32>
    %47 = arith.subf %46, %45 : vector<1x128xf32>
    %48 = arith.subf %23, %24 : vector<1x128xf32>
    %49 = arith.mulf %48, %48 : vector<1x128xf32>
    %cst_17 = arith.constant 0.000000e+00 : f32
    %50 = vector.broadcast %cst_17 : f32 to vector<1x128xf32>
    %51 = arith.select %21, %47, %50 : vector<1x128xi1>, vector<1x128xf32>
    %cst_18 = arith.constant 0.000000e+00 : f32
    %52 = vector.broadcast %cst_18 : f32 to vector<1x128xf32>
    %53 = arith.select %22, %49, %52 : vector<1x128xi1>, vector<1x128xf32>
    %c0_19 = arith.constant 0 : index
    %c0_20 = arith.constant 0 : index
    %c0_21 = arith.constant 0 : index
    %c0_22 = arith.constant 0 : index
    %54 = vector.load %arg4[%c0_19, %c0_20, %c0_21, %c0_22] : memref<1x2x1x128xf32, #tpu.memory_space<vmem>>, vector<1x1x1x128xf32>
    %55 = vector.shape_cast %54 : vector<1x1x1x128xf32> to vector<1x128xf32>
    %56 = arith.addf %55, %51 : vector<1x128xf32>
    %c0_23 = arith.constant 0 : index
    %c0_24 = arith.constant 0 : index
    %c0_25 = arith.constant 0 : index
    %c0_26 = arith.constant 0 : index
    %57 = vector.load %arg4[%c0_23, %c0_24, %c0_25, %c0_26] : memref<1x2x1x128xf32, #tpu.memory_space<vmem>>, vector<1x1x1x128xf32>
    %58 = vector.shape_cast %57 : vector<1x1x1x128xf32> to vector<1x128xf32>
    %59 = vector.shape_cast %56 : vector<1x128xf32> to vector<1x1x1x128xf32>
    tpu.vector_store %arg4[%c0_23, %c0_24, %c0_25, %c0_26], %59 {strides = array<i32>} : memref<1x2x1x128xf32, #tpu.memory_space<vmem>>, vector<1x1x1x128xf32>,
    %c0_27 = arith.constant 0 : index
    %c1 = arith.constant 1 : index
    %c0_28 = arith.constant 0 : index
    %c0_29 = arith.constant 0 : index
    %60 = vector.load %arg4[%c0_27, %c1, %c0_28, %c0_29] : memref<1x2x1x128xf32, #tpu.memory_space<vmem>>, vector<1x1x1x128xf32>
    %61 = vector.shape_cast %60 : vector<1x1x1x128xf32> to vector<1x128xf32>
    %62 = arith.addf %61, %53 : vector<1x128xf32>
    %c0_30 = arith.constant 0 : index
    %c1_31 = arith.constant 1 : index
    %c0_32 = arith.constant 0 : index
    %c0_33 = arith.constant 0 : index
    %63 = vector.load %arg4[%c0_30, %c1_31, %c0_32, %c0_33] : memref<1x2x1x128xf32, #tpu.memory_space<vmem>>, vector<1x1x1x128xf32>
    %64 = vector.shape_cast %63 : vector<1x1x1x128xf32> to vector<1x128xf32>
    %65 = vector.shape_cast %62 : vector<1x128xf32> to vector<1x1x1x128xf32>
    tpu.vector_store %arg4[%c0_30, %c1_31, %c0_32, %c0_33], %65 {strides = array<i32>} : memref<1x2x1x128xf32, #tpu.memory_space<vmem>>, vector<1x1x1x128xf32>,
    return
  }
  func.func @transform_0(%arg0: i32, %arg1: i32) -> (i32, i32) {
    %c1_i32 = arith.constant 1 : i32
    %0 = arith.muli %arg0, %c1_i32 : i32
    %1 = arith.addi %0, %arg1 : i32
    %c0_i32 = arith.constant 0 : i32
    %2 = arith.minsi %1, %c0_i32 : i32
    %c0_i32_0 = arith.constant 0 : i32
    %c0_i32_1 = arith.constant 0 : i32
    return %2, %c0_i32_0 : i32, i32
  }
  func.func @transform_1(%arg0: i32, %arg1: i32) -> (i32, i32) {
    %c1_i32 = arith.constant 1 : i32
    %0 = arith.muli %arg0, %c1_i32 : i32
    %1 = arith.addi %0, %arg1 : i32
    %c0_i32 = arith.constant 0 : i32
    %2 = arith.minsi %1, %c0_i32 : i32
    %c0_i32_0 = arith.constant 0 : i32
    %c0_i32_1 = arith.constant 0 : i32
    return %2, %c0_i32_0 : i32, i32
  }
  func.func @transform_2(%arg0: i32, %arg1: i32) -> (i32, i32, i32, i32) {
    %c0_i32 = arith.constant 0 : i32
    %c0_i32_0 = arith.constant 0 : i32
    %c0_i32_1 = arith.constant 0 : i32
    %c0_i32_2 = arith.constant 0 : i32
    return %arg0, %c0_i32, %c0_i32_0, %c0_i32_1 : i32, i32, i32, i32
  }
}

</mosaic_0001>

<bundles_post_ra>
// kernel: tpu_custom_call.1
= control target key start
LH: loop header
LB: loop body
LE: loop exit
PB: predicated region body
PF: predicated region fallthrough
CT: control target
= control target key end

     0   :  { %7 = vsyncpa [#allocation3], 0  ;;  %s221_s0 = inlined_call_operand.hbm [shape: f32[1,128], index: 0, kind: input, shape index: {}]   ;;  %s222_s1 = inlined_call_operand.vmem [shape: f32[1,128], index: 1, kind: input, shape index: {}]   ;;  %s223_s2 = inlined_call_operand.hbm [shape: f32[1,2,1,128], index: 2, kind: output, shape index: {}]  }
   0x1   :  { %8 = vsyncpa [#allocation4], 0  ;;  %s183_s9 = smov [#allocation2]  }
   0x2   :  { %s20_s10 = sshll.u32 %s183_s9, 4  ;;  %s21_s10 = int_to_ptr.vmem [resolvable:$true] %s20_s10 }
   0x3   :  { %s147_s11 = scalar_lea.vmem %s21_s10, 16  ;;  %s151_s12 = scalar_lea.vmem %s21_s10, 32 }
   0x4   :  { %p148_p0 = scmp.ne.s32.totalorder %s21_s10, %s147_s11  ;;  %p152_p1 = scmp.lt.s32.totalorder %s21_s10, %s21_s10 }
   0x5   :  { %p153_p2 = scmp.lt.s32.totalorder %s151_s12, %s147_s11 }
   0x7   :  { %p154_p3 = por %p153_p2, %p152_p1 }
   0x9   :  { %p155_p4 = pnand %p154_p3, %p148_p0 }
   0xb   :  { %158 = shalt.err (!%p155_p4)
}
   0xc   :  { %23 = dma.hbm_to_vmem [thread:$0]  %s221_s0, 16, %s21_s10, [#allocation3]  }
   0xd   :  { %179 = dma.done.wait [#allocation3], 16  }
   0xe   :  { %180 = vsyncadd [#allocation3], 4294967280  ;;  %v62_v0 = vlaneseq  ;;  %v184_v1 = vmov 0.0   ;;  %v78_v5 = vld [vmem:[#allocation2] sm:$0x1]  ;;  %vm185_vm1 = vmmov 1  }
   0xf   :  { %60 = vst [vmem:[#allocation5] sm:$0x1] %v184_v1  ;;  %61 = vst [vmem:[#allocation5 + $0x1] sm:$0x1] %v184_v1  ;;  %v79_v6 = vld [vmem:[%s222_s1] sm:$0x1]  ;;  %135 = vlog2.f32 %v78_v5 }
  0x10   :  { %v63_v2 = vand.u32 127, %v62_v0  ;;  %v83_v7 = vsub.f32 1.0, %v78_v5  ;;  %v96_v8 = vsub.f32 %v78_v5, %v79_v6  ;;  %v88_v13 = vsub.f32 1.0, %v79_v6  ;;  %s186_s0 = smov [#allocation5]  }
  0x11   :  { %v87_v19 = vmul.f32 2.0, %v79_v6  ;;  %s112_s1 = sshll.u32 %s186_s0, 4  ;;  %s113_s1 = int_to_ptr.vmem [resolvable:$true] %s112_s1 }
  0x12   :  { %v68_v3 = vand.u32 3, %v63_v2  ;;  %137 = vlog2.f32 %v83_v7  ;;  %v97_v9 = vmul.f32 %v96_v8, %v96_v8  ;;  %v89_v20 = vmul.f32 0.5, %v88_v13  ;;  %s159_s17 = scalar_lea.vmem %s113_s1, 32  ;;  %p164_p6 = scmp.lt.s32.totalorder %s113_s1, %s113_s1 }
  0x13   :  { %p160_p5 = scmp.ne.s32.totalorder %s113_s1, %s159_s17  ;;  %p165_p7 = scmp.lt.s32.totalorder %s159_s17, %s159_s17 }
  0x14   :  { %vm207_vm0 = vcmp.eq.s32.totalorder %v68_v3, 0  ;;  %v90_v23 = vadd.f32 %v89_v20, %v87_v19 }
  0x15   :  { %vm77_vm2 = vmxor %vm207_vm0, %vm185_vm1  ;;  %p166_p8 = por %p165_p7, %p164_p6 }
  0x16   :  { %v104_v10 = vld [vmem:[#allocation5 + $0x1] sm:$0x1]  ;;  %v99_v11 = vsel %vm77_vm2, %v97_v9, 0.0  ;;  %v100_v28 = vld [vmem:[#allocation5] sm:$0x1] }
  0x17   :  { %v105_v12 = vadd.f32 %v104_v10, %v99_v11  ;;  %p167_p9 = pnand %p166_p8, %p160_p5 }
  0x19   :  { %106 = vst [vmem:[#allocation5 + $0x1] sm:$0x1] %v105_v12 }
  0x1c   :  { %v136_v14 = vpop.eup %135 }
  0x1d   :  { %v81_v15 = vmul.f32 0.6931472, %v136_v14 }
  0x1f   :  { %v138_v16 = vpop.eup %137  ;;  %v82_v17 = vmax.f32 %v81_v15, -100.0 }
  0x20   :  { %v85_v18 = vmul.f32 0.6931472, %v138_v16 }
  0x21   :  { %v91_v22 = vmul.f32 %v82_v17, %v79_v6 }
  0x22   :  { %v86_v21 = vmax.f32 %v85_v18, -100.0 }
  0x24   :  { %v92_v24 = vmul.f32 %v88_v13, %v86_v21 }
  0x26   :  { %v93_v25 = vadd.f32 %v92_v24, %v91_v22 }
  0x28   :  { %v94_v26 = vmul.f32 %v93_v25, %v90_v23 }
  0x2a   :  { %v95_v27 = vsub.f32 0.0, %v94_v26 }
  0x2c   :  { %v98_v29 = vsel %vm207_vm0, %v95_v27, 0.0 }
  0x2d   :  { %v101_v30 = vadd.f32 %v100_v28, %v98_v29 }
  0x2f   :  { %102 = vst [vmem:[#allocation5] sm:$0x1] %v101_v30 }
  0x30   :  { %170 = shalt.err (!%p167_p9)
}
  0x31   :  { %s187_s18 = smov 16   ;;  %s188_s19 = smov 1  }
  0x32   :  { %118 = dma.vmem_to_hbm [thread:$0]  %s113_s1, 32, %s223_s2, [#allocation4], %s187_s18, %s187_s18, %s188_s19  }
  0x33   :  { %181 = dma.done.wait [#allocation4], 32  }
  0x34   :  { %182 = vsyncadd [#allocation4], 4294967264 }
  0x35   :  { %122 = vsyncpa [#allocation3], 1 }
  0x36   :  { %123 = vsyncpa [#allocation4], 1 }

</bundles_post_ra>
